<compile_context>
chip_gen: v7x
topology: tpu7x:2x2x1
jax: 0.10.0
libtpu: 0.0.40
codegen_flags: <defaults>
</compile_context>

<pallas_src>
import jax
import jax.numpy as jnp
from jax.experimental import pallas as pl
from jax.experimental.pallas import tpu as pltpu


def gnn_kernel(x_ref, adj_ref, w1_ref, b1_ref, w2_ref, b2_ref, w3_ref, b3_ref,
               out_ref):
    x = x_ref[...]          # [N, F]  f32
    adj = adj_ref[...]      # [N, N]  f32

    # bf16 operands for MXU matmuls; all accumulation stays f32.
    adj_bf = adj.astype(jnp.bfloat16)

    # Row sums of adj let us re-associate layer 1 without assuming a
    # row-normalized adjacency:
    #   adj @ (x @ w1 + b1) == (adj @ x) @ w1 + rowsum(adj) * b1
    row_sum = jnp.sum(adj, axis=1, keepdims=True)            # [N, 1] f32

    # ---- layer 1: fc1 -> adjacency aggregation -> ReLU (re-associated) ----
    ax = jnp.dot(adj_bf, x.astype(jnp.bfloat16),
                 preferred_element_type=jnp.float32)          # [N, F]
    h1 = jnp.dot(ax.astype(jnp.bfloat16), w1_ref[...].astype(jnp.bfloat16),
                 preferred_element_type=jnp.float32)
    h1 = h1 + row_sum * b1_ref[...]
    a1 = jnp.maximum(h1, 0.0)
    # TODO(synk): nn.Dropout is identity in eval mode; training-mode dropout
    # (pltpu.prng_random_bits mask) is not implemented here.

    # ---- layer 2: fc2 -> adjacency aggregation -> ReLU (original order) ----
    h2 = jnp.dot(a1.astype(jnp.bfloat16), w2_ref[...].astype(jnp.bfloat16),
                 preferred_element_type=jnp.float32) + b2_ref[...]
    h2 = jnp.dot(adj_bf, h2.astype(jnp.bfloat16),
                 preferred_element_type=jnp.float32)
    a2 = jnp.maximum(h2, 0.0)

    # ---- layer 3: fc3 -> log_softmax over the class axis ----
    logits = jnp.dot(a2.astype(jnp.bfloat16), w3_ref[...].astype(jnp.bfloat16),
                     preferred_element_type=jnp.float32) + b3_ref[...]
    m = jnp.max(logits, axis=1, keepdims=True)
    z = logits - m
    lse = jnp.log(jnp.sum(jnp.exp(z), axis=1, keepdims=True))
    out_ref[...] = (z - lse).astype(out_ref.dtype)


def gnn_forward(x_in, adja, params):
    """Batched GNN forward.  x_in: [B,N,F] (or [N,F]), adja: [B,N,N] (or [N,N])."""
    w1, b1, w2, b2, w3, b3 = params

    squeeze = False
    if x_in.ndim == 2:
        x_in, adja = x_in[None], adja[None]
        squeeze = True

    B, N, F = x_in.shape
    nh_1 = w1.shape[1]
    nh_2 = w2.shape[1]
    nc = w3.shape[1]

    flops_per_graph = 2 * N * (N * F + F * nh_1 + nh_1 * nh_2 + N * nh_2 + nh_2 * nc)
    bytes_accessed = 4 * (int(x_in.size) + int(adja.size) + B * N * nc
                          + int(w1.size) + int(b1.size) + int(w2.size)
                          + int(b2.size) + int(w3.size) + int(b3.size))

    out = pl.pallas_call(
        gnn_kernel,
        out_shape=jax.ShapeDtypeStruct((B, N, nc), jnp.float32),
        grid=(B,),
        in_specs=[
            pl.BlockSpec((None, N, F), lambda b: (b, 0, 0)),   # x  (per graph)
            pl.BlockSpec((None, N, N), lambda b: (b, 0, 0)),   # adj (per graph)
            pl.BlockSpec((F, nh_1),    lambda b: (0, 0)),      # w1 (shared)
            pl.BlockSpec((1, nh_1),    lambda b: (0, 0)),      # b1
            pl.BlockSpec((nh_1, nh_2), lambda b: (0, 0)),      # w2
            pl.BlockSpec((1, nh_2),    lambda b: (0, 0)),      # b2
            pl.BlockSpec((nh_2, nc),   lambda b: (0, 0)),      # w3
            pl.BlockSpec((1, nc),      lambda b: (0, 0)),      # b3
        ],
        out_specs=pl.BlockSpec((None, N, nc), lambda b: (b, 0, 0)),
        compiler_params=pltpu.CompilerParams(
            dimension_semantics=("parallel",),                 # split batch on v7x's 2 TCs
        ),
        cost_estimate=pl.CostEstimate(
            flops=B * flops_per_graph,
            transcendentals=2 * B * N * nc,                    # exp + log in log_softmax
            bytes_accessed=bytes_accessed,
        ),
    )(x_in, adja, w1, b1, w2, b2, w3, b3)

    return out[0] if squeeze else out


def init_params(key, n_feat, nh_1, nh_2, nc):
    """Deterministic synthetic parameters (Linear weights stored as [in, out])."""
    ks = jax.random.split(key, 6)

    def lin(kw, kb, fan_in, fan_out):
        bound = 1.0 / jnp.sqrt(fan_in)
        w = jax.random.uniform(kw, (fan_in, fan_out), jnp.float32, -bound, bound)
        b = jax.random.uniform(kb, (1, fan_out), jnp.float32, -bound, bound)
        return w, b

    w1, b1 = lin(ks[0], ks[1], n_feat, nh_1)
    w2, b2 = lin(ks[2], ks[3], nh_1, nh_2)
    w3, b3 = lin(ks[4], ks[5], nh_2, nc)
    return (w1, b1, w2, b2, w3, b3)


if __name__ == "__main__":
    key = jax.random.PRNGKey(0)
    k_x, k_a, k_p = jax.random.split(key, 3)

    B, N, n_feat, nh_1, nh_2, nc = 4, 8, 16, 32, 32, 8

    x_in = jax.random.normal(k_x, (B, N, n_feat), jnp.float32)

    # simple symmetric adjacency with self loops, row-normalized, per graph
    a = jax.random.uniform(k_a, (B, N, N), jnp.float32)
    a = (a > 0.5).astype(jnp.float32)
    adja = ((a + jnp.swapaxes(a, 1, 2)) > 0).astype(jnp.float32) \
        + jnp.eye(N, dtype=jnp.float32)
    adja = adja / jnp.sum(adja, axis=2, keepdims=True)

    params = init_params(k_p, n_feat, nh_1, nh_2, nc)

    out = gnn_forward(x_in, adja, params)
    jax.block_until_ready(out)

    # pure-JAX reference with the original (un-reassociated) f32 math
    def ref(x, adj, prm):
        w1, b1, w2, b2, w3, b3 = prm
        h1 = jnp.maximum(adj @ (x @ w1 + b1), 0.0)
        h2 = jnp.maximum(adj @ (h1 @ w2 + b2), 0.0)
        return jax.nn.log_softmax(h2 @ w3 + b3, axis=-1)

    expected = ref(x_in, adja, params)
    row_sums = jnp.exp(out).sum(axis=-1)

    assert out.shape == (B, N, nc)
    assert bool(jnp.all(jnp.abs(row_sums - 1.0) < 1e-4))          # valid log-probs
    assert bool(jnp.max(jnp.abs(out - expected)) < 0.1)           # bf16-operand tolerance

    print("KERNEL_OK")
</pallas_src>

<mosaic_0001>
module attributes {stable_mosaic.version = 11 : i64} {
  func.func @gnn_kernel(%arg0: i32, %arg1: memref<1x8x16xf32, #tpu.memory_space<vmem>>, %arg2: memref<1x8x8xf32, #tpu.memory_space<vmem>>, %arg3: memref<16x32xf32, #tpu.memory_space<vmem>>, %arg4: memref<1x32xf32, #tpu.memory_space<vmem>>, %arg5: memref<32x32xf32, #tpu.memory_space<vmem>>, %arg6: memref<1x32xf32, #tpu.memory_space<vmem>>, %arg7: memref<32x8xf32, #tpu.memory_space<vmem>>, %arg8: memref<1x8xf32, #tpu.memory_space<vmem>>, %arg9: memref<1x8x8xf32, #tpu.memory_space<vmem>>) attributes {dimension_semantics = [#tpu.dimension_semantics<parallel>], iteration_bounds = array<i64: 4>, scalar_prefetch = 0 : i64, scratch_operands = 0 : i64, tpu.core_type = #tpu.core_type<tc>, window_params = [{transform_indices = @transform_0, window_bounds = array<i64: 1, 8, 16>}, {transform_indices = @transform_1, window_bounds = array<i64: 1, 8, 8>}, {pipeline_mode = #tpu.pipeline_mode<synchronous>, transform_indices = @transform_2, window_bounds = array<i64: 16, 32>}, {pipeline_mode = #tpu.pipeline_mode<synchronous>, transform_indices = @transform_3, window_bounds = array<i64: 1, 32>}, {pipeline_mode = #tpu.pipeline_mode<synchronous>, transform_indices = @transform_4, window_bounds = array<i64: 32, 32>}, {pipeline_mode = #tpu.pipeline_mode<synchronous>, transform_indices = @transform_5, window_bounds = array<i64: 1, 32>}, {pipeline_mode = #tpu.pipeline_mode<synchronous>, transform_indices = @transform_6, window_bounds = array<i64: 32, 8>}, {pipeline_mode = #tpu.pipeline_mode<synchronous>, transform_indices = @transform_7, window_bounds = array<i64: 1, 8>}, {transform_indices = @transform_8, window_bounds = array<i64: 1, 8, 8>}]} {
    %c0 = arith.constant 0 : index
    %c0_0 = arith.constant 0 : index
    %c0_1 = arith.constant 0 : index
    %0 = vector.load %arg1[%c0, %c0_0, %c0_1] : memref<1x8x16xf32, #tpu.memory_space<vmem>>, vector<1x8x16xf32>
    %1 = vector.shape_cast %0 : vector<1x8x16xf32> to vector<8x16xf32>
    %c0_2 = arith.constant 0 : index
    %c0_3 = arith.constant 0 : index
    %c0_4 = arith.constant 0 : index
    %2 = vector.load %arg2[%c0_2, %c0_3, %c0_4] : memref<1x8x8xf32, #tpu.memory_space<vmem>>, vector<1x8x8xf32>
    %3 = vector.shape_cast %2 : vector<1x8x8xf32> to vector<8x8xf32>
    %4 = arith.truncf %3 : vector<8x8xf32> to vector<8x8xbf16>
    %cst = arith.constant dense<0.000000e+00> : vector<8xf32>
    %5 = vector.multi_reduction <add>, %3, %cst [1] : vector<8x8xf32> to vector<8xf32>
    %6 = vector.shape_cast %5 : vector<8xf32> to vector<8x1xf32>
    %7 = arith.truncf %1 : vector<8x16xf32> to vector<8x16xbf16>
    %cst_5 = arith.constant dense<0.000000e+00> : vector<8x16xf32>
    %8 = tpu.matmul %4, %7, %cst_5 {dimension_numbers = #tpu.dot_dimension_numbers<[1], [0], [0], [1], [0, 0, 1, 1], [], []>} : vector<8x8xbf16>, vector<8x16xbf16>, vector<8x16xf32> -> vector<8x16xf32>
    %9 = arith.truncf %8 : vector<8x16xf32> to vector<8x16xbf16>
    %c0_6 = arith.constant 0 : index
    %c0_7 = arith.constant 0 : index
    %10 = vector.load %arg3[%c0_6, %c0_7] : memref<16x32xf32, #tpu.memory_space<vmem>>, vector<16x32xf32>
    %11 = arith.truncf %10 : vector<16x32xf32> to vector<16x32xbf16>
    %cst_8 = arith.constant dense<0.000000e+00> : vector<8x32xf32>
    %12 = tpu.matmul %9, %11, %cst_8 {dimension_numbers = #tpu.dot_dimension_numbers<[1], [0], [0], [1], [0, 0, 1, 1], [], []>} : vector<8x16xbf16>, vector<16x32xbf16>, vector<8x32xf32> -> vector<8x32xf32>
    %c0_9 = arith.constant 0 : index
    %c0_10 = arith.constant 0 : index
    %13 = vector.load %arg4[%c0_9, %c0_10] : memref<1x32xf32, #tpu.memory_space<vmem>>, vector<1x32xf32>
    %14 = vector.broadcast %6 : vector<8x1xf32> to vector<8x32xf32>
    %15 = vector.broadcast %13 : vector<1x32xf32> to vector<8x32xf32>
    %16 = arith.mulf %14, %15 : vector<8x32xf32>
    %17 = arith.addf %12, %16 : vector<8x32xf32>
    %cst_11 = arith.constant 0.000000e+00 : f32
    %18 = vector.broadcast %cst_11 : f32 to vector<8x32xf32>
    %19 = arith.maximumf %17, %18 : vector<8x32xf32>
    %20 = arith.truncf %19 : vector<8x32xf32> to vector<8x32xbf16>
    %c0_12 = arith.constant 0 : index
    %c0_13 = arith.constant 0 : index
    %21 = vector.load %arg5[%c0_12, %c0_13] : memref<32x32xf32, #tpu.memory_space<vmem>>, vector<32x32xf32>
    %22 = arith.truncf %21 : vector<32x32xf32> to vector<32x32xbf16>
    %cst_14 = arith.constant dense<0.000000e+00> : vector<8x32xf32>
    %23 = tpu.matmul %20, %22, %cst_14 {dimension_numbers = #tpu.dot_dimension_numbers<[1], [0], [0], [1], [0, 0, 1, 1], [], []>} : vector<8x32xbf16>, vector<32x32xbf16>, vector<8x32xf32> -> vector<8x32xf32>
    %c0_15 = arith.constant 0 : index
    %c0_16 = arith.constant 0 : index
    %24 = vector.load %arg6[%c0_15, %c0_16] : memref<1x32xf32, #tpu.memory_space<vmem>>, vector<1x32xf32>
    %25 = vector.broadcast %24 : vector<1x32xf32> to vector<8x32xf32>
    %26 = arith.addf %23, %25 : vector<8x32xf32>
    %27 = arith.truncf %26 : vector<8x32xf32> to vector<8x32xbf16>
    %cst_17 = arith.constant dense<0.000000e+00> : vector<8x32xf32>
    %28 = tpu.matmul %4, %27, %cst_17 {dimension_numbers = #tpu.dot_dimension_numbers<[1], [0], [0], [1], [0, 0, 1, 1], [], []>} : vector<8x8xbf16>, vector<8x32xbf16>, vector<8x32xf32> -> vector<8x32xf32>
    %cst_18 = arith.constant 0.000000e+00 : f32
    %29 = vector.broadcast %cst_18 : f32 to vector<8x32xf32>
    %30 = arith.maximumf %28, %29 : vector<8x32xf32>
    %31 = arith.truncf %30 : vector<8x32xf32> to vector<8x32xbf16>
    %c0_19 = arith.constant 0 : index
    %c0_20 = arith.constant 0 : index
    %32 = vector.load %arg7[%c0_19, %c0_20] : memref<32x8xf32, #tpu.memory_space<vmem>>, vector<32x8xf32>
    %33 = arith.truncf %32 : vector<32x8xf32> to vector<32x8xbf16>
    %cst_21 = arith.constant dense<0.000000e+00> : vector<8x8xf32>
    %34 = tpu.matmul %31, %33, %cst_21 {dimension_numbers = #tpu.dot_dimension_numbers<[1], [0], [0], [1], [0, 0, 1, 1], [], []>} : vector<8x32xbf16>, vector<32x8xbf16>, vector<8x8xf32> -> vector<8x8xf32>
    %c0_22 = arith.constant 0 : index
    %c0_23 = arith.constant 0 : index
    %35 = vector.load %arg8[%c0_22, %c0_23] : memref<1x8xf32, #tpu.memory_space<vmem>>, vector<1x8xf32>
    %36 = vector.broadcast %35 : vector<1x8xf32> to vector<8x8xf32>
    %37 = arith.addf %34, %36 : vector<8x8xf32>
    %cst_24 = arith.constant dense<0xFF800000> : vector<8xf32>
    %38 = vector.multi_reduction <maximumf>, %37, %cst_24 [1] : vector<8x8xf32> to vector<8xf32>
    %39 = vector.shape_cast %38 : vector<8xf32> to vector<8x1xf32>
    %40 = vector.broadcast %39 : vector<8x1xf32> to vector<8x8xf32>
    %41 = arith.subf %37, %40 : vector<8x8xf32>
    %42 = math.exp %41 : vector<8x8xf32>
    %cst_25 = arith.constant dense<0.000000e+00> : vector<8xf32>
    %43 = vector.multi_reduction <add>, %42, %cst_25 [1] : vector<8x8xf32> to vector<8xf32>
    %44 = vector.shape_cast %43 : vector<8xf32> to vector<8x1xf32>
    %45 = math.log %44 : vector<8x1xf32>
    %46 = vector.broadcast %45 : vector<8x1xf32> to vector<8x8xf32>
    %47 = arith.subf %41, %46 : vector<8x8xf32>
    %c0_26 = arith.constant 0 : index
    %c0_27 = arith.constant 0 : index
    %c0_28 = arith.constant 0 : index
    %48 = vector.load %arg9[%c0_26, %c0_27, %c0_28] : memref<1x8x8xf32, #tpu.memory_space<vmem>>, vector<1x8x8xf32>
    %49 = vector.shape_cast %48 : vector<1x8x8xf32> to vector<8x8xf32>
    %50 = vector.shape_cast %47 : vector<8x8xf32> to vector<1x8x8xf32>
    tpu.vector_store %arg9[%c0_26, %c0_27, %c0_28], %50 {strides = array<i32>} : memref<1x8x8xf32, #tpu.memory_space<vmem>>, vector<1x8x8xf32>,
    return
  }
  func.func @transform_0(%arg0: i32) -> (i32, i32, i32) {
    %c0_i32 = arith.constant 0 : i32
    %c0_i32_0 = arith.constant 0 : i32
    %c0_i32_1 = arith.constant 0 : i32
    return %arg0, %c0_i32, %c0_i32_0 : i32, i32, i32
  }
  func.func @transform_1(%arg0: i32) -> (i32, i32, i32) {
    %c0_i32 = arith.constant 0 : i32
    %c0_i32_0 = arith.constant 0 : i32
    %c0_i32_1 = arith.constant 0 : i32
    return %arg0, %c0_i32, %c0_i32_0 : i32, i32, i32
  }
  func.func @transform_2(%arg0: i32) -> (i32, i32) {
    %c0_i32 = arith.constant 0 : i32
    %c0_i32_0 = arith.constant 0 : i32
    %c0_i32_1 = arith.constant 0 : i32
    return %c0_i32, %c0_i32_0 : i32, i32
  }
  func.func @transform_3(%arg0: i32) -> (i32, i32) {
    %c0_i32 = arith.constant 0 : i32
    %c0_i32_0 = arith.constant 0 : i32
    %c0_i32_1 = arith.constant 0 : i32
    return %c0_i32, %c0_i32_0 : i32, i32
  }
  func.func @transform_4(%arg0: i32) -> (i32, i32) {
    %c0_i32 = arith.constant 0 : i32
    %c0_i32_0 = arith.constant 0 : i32
    %c0_i32_1 = arith.constant 0 : i32
    return %c0_i32, %c0_i32_0 : i32, i32
  }
  func.func @transform_5(%arg0: i32) -> (i32, i32) {
    %c0_i32 = arith.constant 0 : i32
    %c0_i32_0 = arith.constant 0 : i32
    %c0_i32_1 = arith.constant 0 : i32
    return %c0_i32, %c0_i32_0 : i32, i32
  }
  func.func @transform_6(%arg0: i32) -> (i32, i32) {
    %c0_i32 = arith.constant 0 : i32
    %c0_i32_0 = arith.constant 0 : i32
    %c0_i32_1 = arith.constant 0 : i32
    return %c0_i32, %c0_i32_0 : i32, i32
  }
  func.func @transform_7(%arg0: i32) -> (i32, i32) {
    %c0_i32 = arith.constant 0 : i32
    %c0_i32_0 = arith.constant 0 : i32
    %c0_i32_1 = arith.constant 0 : i32
    return %c0_i32, %c0_i32_0 : i32, i32
  }
  func.func @transform_8(%arg0: i32) -> (i32, i32, i32) {
    %c0_i32 = arith.constant 0 : i32
    %c0_i32_0 = arith.constant 0 : i32
    %c0_i32_1 = arith.constant 0 : i32
    return %arg0, %c0_i32, %c0_i32_0 : i32, i32, i32
  }
}

</mosaic_0001>

<bundles_post_ra>
// kernel: tpu_custom_call.1
= control target key start
LH: loop header
LB: loop body
LE: loop exit
PB: predicated region body
PF: predicated region fallthrough
CT: control target
= control target key end

     0   :  { %13 = vsyncpa [#allocation3], 0  ;;  %s1390_s0 = inlined_call_operand.vmem [shape: f32[4,8,16], index: 0, kind: input, shape index: {}]   ;;  %s1391_s1 = inlined_call_operand.hbm [shape: f32[4,8,8], index: 1, kind: input, shape index: {}]   ;;  %s1392_s2 = inlined_call_operand.hbm [shape: f32[16,32], index: 2, kind: input, shape index: {}]   ;;  %s1393_s3 = inlined_call_operand.vmem [shape: f32[1,32], index: 3, kind: input, shape index: {}]   ;;  %s1394_s4 = inlined_call_operand.hbm [shape: f32[32,32], index: 4, kind: input, shape index: {}]   ;;  %s1395_s5 = inlined_call_operand.vmem [shape: f32[1,32], index: 5, kind: input, shape index: {}]   ;;  %s1396_s6 = inlined_call_operand.vmem [shape: f32[32,8], index: 6, kind: input, shape index: {}]   ;;  %s1397_s7 = inlined_call_operand.vmem [shape: f32[1,8], index: 7, kind: input, shape index: {}]   ;;  %s1398_s8 = inlined_call_operand.hbm [shape: f32[4,8,8], index: 8, kind: output, shape index: {}]  }
   0x1   :  { %15 = vsyncpa [#allocation3 + $0x1], 0 }
   0x2   :  { %16 = vsyncpa [#allocation6], 0 }
   0x3   :  { %17 = vsyncpa [#allocation4], 0 }
   0x4   :  { %19 = vsyncpa [#allocation4 + $0x1], 0  ;;  %s1125_s27 = smov 0   ;;  %s1127_s28 = smov 0  }
   0x5   :  { %s1129_s29 = smov 0   ;;  %s1131_s30 = smov 0  }
   0x6 LB: > { %s1146_s9 = sadd.s32 4294967295, %s1070_s30   ;;  %s768_s10 = sadd.s32 4294967294, %s1070_s30   ;;  %s1070_s30 = sphi %s1131_s30, %s1417_s30   ;;  %s1066_s29 = sphi %s1129_s29, %s1416_s29   ;;  %s1062_s28 = sphi %s1127_s28, %s1415_s28   ;;  %s1058_s27 = sphi %s1125_s27, %s1414_s27  }
   0x7   : > { %p71_p0 = scmp.ne.s32.totalorder %s1062_s28, %s1058_s27  ;;  %p1399_p1 = scmp.eq.s32.totalorder %s1146_s9, 0 }
   0x8   : > { %p227_p3 = scmp.eq.s32.totalorder %s768_s10, 3  ;;  %p769_p5 = scmp.ge.s32.totalorder %s1070_s30, 1 }
   0x9   : > { %p1155_p4 = por %p1399_p1, %p71_p0  ;;  %p234_p7 = scmp.lt.s32.totalorder %s1070_s30, 5 }
   0xa   : > { %p1160_p6 = por %p227_p3, %p71_p0  ;;  %s1072_s14 = smov [#allocation5]  }
   0xb   : > { %s1402_s11 = scalar_select %p1155_p4, 1, 0 }
   0xc   : > { %s1403_s12 = scalar_select %p1160_p6, 1, 0 }
   0xd   : > { %p1165_p8 = pnand %p769_p5, %p234_p7  ;;  %s246_s15 = sshll.u32 %s1072_s14, 4  ;;  %s247_s15 = int_to_ptr.vmem [resolvable:$true] %s246_s15 }
   0xe   : > { %s1073_s17 = smov [#allocation7]   ;;  %s914_s21 = scalar_lea.hbm %s1392_s2, 256 }
   0xf   : > { %s1404_s13 = scalar_select %p1165_p8, 1, 0 }
  0x10   : > { %p851_p9 = pneg %p1165_p8  ;;  %s262_s18 = sshll.u32 %s1073_s17, 4  ;;  %s1177_s18 = int_to_ptr.vmem [resolvable:$true] %s262_s18 }
  0x11   : > { %p915_p11 = scmp.ne.s32.totalorder %s1392_s2, %s914_s21  ;;  %p921_p3 = scmp.lt.u32.totalorder %s914_s21, %s1392_s2 }
  0x12   : > { %p1173_p10 = pnand %p851_p9, %p1399_p1 }
  0x14   : > { %p916_p12 = pneg %p1173_p10 }
  0x16   : > { %p917_p13 = pnand %p916_p12, %p915_p11 }
  0x18   : > { %p918_p0 = pneg %p917_p13 }
  0x1a   : > { %p923_p5 = pnand %p921_p3, %p918_p0 }
  0x1c   : > { %926 = shalt.err (!%p923_p5)
}
  0x1d   : > { %s927_s26 = scalar_lea.vmem %s247_s15, 256  ;;  %p935_p2 = scmp.lt.s32.totalorder %s247_s15, %s247_s15 }
  0x1e   : > { %p928_p7 = scmp.ne.s32.totalorder %s247_s15, %s927_s26  ;;  %p936_p6 = scmp.lt.s32.totalorder %s927_s26, %s927_s26 }
  0x20   : > { %p930_p9 = pnand %p928_p7, %p916_p12  ;;  %p937_p4 = por %p936_p6, %p935_p2 }
  0x22   : > { %p931_p1 = pneg %p930_p9 }
  0x24   : > { %p938_p8 = pnand %p937_p4, %p931_p1 }
  0x26   : > { %941 = shalt.err (!%p938_p8)
}
  0x27   : > { %s1074_s10 = smov 128   ;;  %s1075_s14 = smov 8  }
  0x28   : > { %854 = dma.hbm_to_vmem [thread:$0]  (!%p1173_p10), %s1392_s2, 256, %s247_s15, [#allocation6], %s1074_s10, %s1074_s10, %s1075_s14  }
  0x29   : > { %s942_s22 = scalar_lea.hbm %s1394_s4, 512 }
  0x2a   : > { %p943_p11 = scmp.ne.s32.totalorder %s1394_s4, %s942_s22  ;;  %p949_p4 = scmp.lt.u32.totalorder %s942_s22, %s1394_s4 }
  0x2c   : > { %p945_p1 = pnand %p943_p11, %p916_p12 }
  0x2e   : > { %p946_p2 = pneg %p945_p1 }
  0x30   : > { %p951_p6 = pnand %p949_p4, %p946_p2 }
  0x32   : > { %954 = shalt.err (!%p951_p6)
}
  0x33   : > { %s955_s15 = scalar_lea.vmem %s1177_s18, 512  ;;  %p963_p3 = scmp.lt.s32.totalorder %s1177_s18, %s1177_s18 }
  0x34   : > { %p956_p8 = scmp.ne.s32.totalorder %s1177_s18, %s955_s15  ;;  %p964_p5 = scmp.lt.s32.totalorder %s955_s15, %s955_s15 }
  0x36   : > { %p958_p13 = pnand %p956_p8, %p916_p12  ;;  %p965_p7 = por %p964_p5, %p963_p3 }
  0x38   : > { %p959_p0 = pneg %p958_p13 }
  0x3a   : > { %p966_p9 = pnand %p965_p7, %p959_p0 }
  0x3c   : > { %969 = shalt.err (!%p966_p9)
}
  0x3d   : > { %857 = dma.hbm_to_vmem [thread:$0]  (!%p1173_p10), %s1394_s4, 512, %s1177_s18, [#allocation6], %s1074_s10, %s1074_s10, %s1075_s14  }
  0x3e   : > { %s1227_s20 = sadd.s32 1, %s1070_s30   ;;  %s58_s16 = sadd.s32 1, %s1066_s29 }
  0x3f   : > { %s55_s21 = ssub.s32 %s1070_s30, %s1227_s20  ;;  %p65_p12 = scmp.ne.s32.totalorder %s1066_s29, %s1062_s28 }
  0x40   : > { %p56_p11 = scmp.eq.s32.totalorder %s55_s21, 0  ;;  %p66_p1 = scmp.eq.s32.totalorder %s1070_s30, 0 }
  0x41   : > { %p1406_p2 = scmp.eq.s32.totalorder %s1146_s9, 3  ;;  %p868_p6 = scmp.lt.s32.totalorder %s1070_s30, 4 }
  0x42   : > { %s1243_s23 = scalar_select %p56_p11, %s1066_s29, %s58_s16  }
  0x43   : > { %p1237_p4 = por %p1406_p2, %p65_p12  ;;  %p67_p8 = por %p66_p1, %p65_p12 }
  0x44   : > { %s292_s24 = sand.u32 1, %s1066_s29   ;;  %s774_s18 = sshll.u32 %s1070_s30, 7 }
  0x45   : > { %s773_s25 = sshll.u32 %s292_s24, 3  ;;  %s1250_s26 = scalar_lea.hbm %s1391_s1, %s774_s18 }
  0x46   : > { %s296_s15 = scalar_lea.vmem [#allocation2], %s773_s25  ;;  %p1254_p10 = pnand %p868_p6, %p67_p8 }
  0x47   : > { %s303_s17 = sshll.u32 %s296_s15, 4  ;;  %s293_s16 = scalar_lea.sflag [#allocation3], %s292_s24  ;;  %s1252_s17 = int_to_ptr.vmem [resolvable:$true] %s303_s17 }
  0x48   : > { %s970_s21 = scalar_lea.hbm %s1250_s26, 128  ;;  %p972_p0 = pneg %p1254_p10 }
  0x49   : > { %p971_p13 = scmp.ne.s32.totalorder %s1250_s26, %s970_s21  ;;  %s975_s10 = scalar_lea.hbm %s1391_s1, 512 }
  0x4a   : > { %p976_p7 = scmp.lt.u32.totalorder %s1250_s26, %s1391_s1  ;;  %p977_p9 = scmp.lt.u32.totalorder %s975_s10, %s970_s21 }
  0x4b   : > { %p973_p3 = pnand %p972_p0, %p971_p13  ;;  %p979_p11 = scmp.lt.u32.totalorder %s970_s21, %s1250_s26 }
  0x4c   : > { %p978_p12 = por %p977_p9, %p976_p7 }
  0x4d   : > { %p974_p5 = pneg %p973_p3 }
  0x4e   : > { %p980_p1 = por %p979_p11, %p978_p12 }
  0x50   : > { %p981_p2 = pnand %p980_p1, %p974_p5 }
  0x52   : > { %984 = shalt.err (!%p981_p2)
}
  0x53   : > { %s985_s24 = scalar_lea.vmem %s1252_s17, 128  ;;  %s1076_s18 = smov [#allocation2]  }
  0x54   : > { %p986_p6 = scmp.ne.s32.totalorder %s1252_s17, %s985_s24  ;;  %s990_s25 = sshll.u32 %s1076_s18, 4  ;;  %s991_s25 = int_to_ptr.vmem [resolvable:$false] %s990_s25 }
  0x55   : > { %s992_s14 = scalar_lea.vmem %s991_s25, 256  ;;  %p993_p3 = scmp.lt.s32.totalorder %s1252_s17, %s991_s25 }
  0x56   : > { %p988_p8 = pnand %p986_p6, %p972_p0  ;;  %p994_p7 = scmp.lt.s32.totalorder %s992_s14, %s985_s24 }
  0x58   : > { %p989_p13 = pneg %p988_p8  ;;  %p995_p9 = por %p994_p7, %p993_p3 }
  0x5a   : > { %p996_p12 = pnand %p995_p9, %p989_p13 }
  0x5c   : > { %999 = shalt.err (!%p996_p12)
}
  0x5d   : > { %861 = dma.hbm_to_vmem [thread:$0]  (!%p1254_p10), %s1250_s26, 128, %s1252_s17, %s293_s16  }
  0x5e   : > { %p1409_p5 = scmp.ne.s32.totalorder %s1404_s13, 0 }
  0x5f   : > { %s1286_s21 = sand.u32 (!%p1409_p5), 1, %s1062_s28   ;;  %p1410_p0 = scmp.ne.s32.totalorder (!%p1409_p5), %s1402_s11, 0 }
  0x60   : > { %312 = sbr.rel (%p1409_p5) target bundleno = 1532 (0x5fc), region = 52  ;;  %s776_s10 = sshll.u32 (!%p1409_p5), %s1286_s21, 3 }
  0x61   : > { %s315_s15 = scalar_lea.sflag (!%p1409_p5), [#allocation3], %s1286_s21  ;;  %s318_s24 = scalar_lea.vmem (!%p1409_p5), [#allocation2], %s776_s10 }
  0x67   : > { %1045 = dma.done.wait (%p1410_p0), %s315_s15, 128  }
  0x68   : > { %1047 = vsyncadd (%p1410_p0), %s315_s15, 4294967168  ;;  %p1411_p10 = scmp.eq.s32.totalorder %s1146_s9, 0 }
  0x6a   : > { %1049 = dma.done.wait (%p1411_p10), [#allocation6], 768   ;;  %p1412_p11 = pmov %p1411_p10 }
  0x6b   : > { %p363_p1 = scmp.lt.s32.totalorder %s1146_s9, 3  ;;  %v1077_v0 = vmov 0.0   ;;  %vm1078_vm0 = vmmov 0   ;;  %vm379_vm1 = vcmask 1043456   ;;  %v369_v2 = vld [vmem:[%s318_s24] sm:$0xff]  ;;  %vm371_vm2 = vcmask 64512  }
  0x6c   : > { %1051 = vsyncadd (%p1412_p11), [#allocation6], 4294966528  ;;  %805 = vmatprep.subr.bf16.mxu0 %v1077_v0  ;;  %807 = vmatprep.mubr.msk.bf16.mxu0 %vm1078_vm0, %v1077_v0  ;;  %v370_v5 = vpack.c.bf16 %v369_v2, %v369_v2  ;;  %v424_v6 = vld [vmem:[#allocation5] sm:$0xff]  ;;  %v425_v7 = vld [vmem:[#allocation5 + $0x8] sm:$0xff]  ;;  %v372_v9 = vsel %vm371_vm2, %v369_v2, 0.0  ;;  %vm435_vm3 = vcmask 130048  }
  0x6d   : > { %s364_s13 = scalar_select %p363_p1, %s1146_s9, 3  ;;  %811 = vmatprep.subr.bf16.mxu1 %v1077_v0  ;;  %813 = vmatprep.mubr.msk.bf16.mxu1 %vm1078_vm0, %v1077_v0  ;;  %v426_v8 = vpack.c.bf16 %v425_v7, %v424_v6  ;;  %v481_v15 = vld [vmem:[#allocation7] sm:$0xff]  ;;  %v482_v16 = vld [vmem:[#allocation7 + $0x8] sm:$0xff]  ;;  %v483_v18 = vld [vmem:[#allocation7 + $0x10] sm:$0xff]  ;;  %vm494_vm4 = vcmask 261120  }
  0x6e   : > { %373 = vadd.xlane.f32.xlu0 %v372_v9  ;;  %v485_v17 = vpack.c.bf16 %v482_v16, %v481_v15  ;;  %v484_v19 = vld [vmem:[#allocation7 + $0x18] sm:$0xff]  ;;  %v782_v21 = vld [vmem:[%s1393_s3] ss:$0 sm:$0xff]  ;;  %v585_v32 = vld [vmem:[%s1396_s6 + $0x8] sm:$0xff]  ;;  %s790_s14 = sshll.u32 %s1146_s9, 7  ;;  %s362_s15 = scalar_lea.vmem [#allocation8], %s776_s10 }
  0x6f   : > { %s780_s11 = sshll.u32 %s364_s13, 3  ;;  %812 = vmatpush3.bf16.msra.mxu1 %v426_v8  ;;  %v486_v20 = vpack.c.bf16 %v484_v19, %v483_v18  ;;  %v584_v31 = vld [vmem:[%s1396_s6] sm:$0xff]  ;;  %v586_v42 = vld [vmem:[%s1396_s6 + $0x10] sm:$0xff]  ;;  %v587_v43 = vld [vmem:[%s1396_s6 + $0x18] sm:$0xff]  ;;  %s667_s24 = sshll.u32 %s362_s15, 4  ;;  %s1348_s24 = int_to_ptr.vmem [resolvable:$true] %s667_s24 }
  0x70   : > { %s366_s19 = scalar_lea.vmem %s1390_s0, %s780_s11  ;;  %825 = vmatprep.subr.bf16.mxu1 %v1077_v0  ;;  %v588_v33 = vpack.c.bf16 %v585_v32, %v584_v31  ;;  %v784_v34 = vld [vmem:[%s1395_s5] ss:$0 sm:$0xff]  ;;  %v589_v44 = vpack.c.bf16 %v587_v43, %v586_v42  ;;  %s1346_s26 = scalar_lea.hbm %s1398_s8, %s790_s14 }
  0x71   : > { %v368_v1 = vld [vmem:[%s366_s19] sm:$0xff]  ;;  %s654_s17 = scalar_lea.sflag [#allocation4], %s1286_s21  ;;  %s1000_s19 = scalar_lea.vmem %s1348_s24, 128 }
  0x72   : > { %v375_v3 = vpack.c.bf16 %v368_v1, %v368_v1  ;;  %v787_v51 = vld [vmem:[%s1397_s7] ss:$0 sm:$0xff]  ;;  %p1001_p2 = scmp.ne.s32.totalorder %s1348_s24, %s1000_s19  ;;  %s1079_s9 = smov [#allocation8]  }
  0x73   : > { %s1004_s10 = sshll.u32 %s1079_s9, 4  ;;  %s1005_s10 = int_to_ptr.vmem [resolvable:$false] %s1004_s10 }
  0x74   : > { %v381_v4 = vsel %vm379_vm1, %v375_v3, 0  ;;  %p1002_p6 = pnand %p1001_p2, %p1237_p4  ;;  %s1006_s16 = scalar_lea.vmem %s1005_s10, 256 }
  0x75   : > { %806 = vmatpush3.bf16.msra.mxu0 %v381_v4  ;;  %p1007_p13 = scmp.lt.s32.totalorder %s1348_s24, %s1005_s10  ;;  %p1008_p3 = scmp.lt.s32.totalorder %s1006_s16, %s1000_s19 }
  0x76   : > { %817 = vmatprep.subr.bf16.mxu0 %v1077_v0  ;;  %p1003_p8 = pneg %p1002_p6 }
  0x77   : > { %p1009_p7 = por %p1008_p3, %p1007_p13 }
  0x78   : > { %808 = vmatmul.mubr.msk.bf16.vlgmr.msra.gmra.mrb[0].mxu0 %vm371_vm2, %v370_v5 }
  0x79   : > { %821 = vmatprep.mubr.msk.bf16.mxu0 %vm1078_vm0, %v1077_v0  ;;  %818 = vmatpush3.bf16.msra.mxu0 %v485_v17  ;;  %p1010_p9 = pnand %p1009_p7, %p1003_p8 }
  0x7a   : > { %819 = vmatprep.subr.bf16.mxu0 %v1077_v0 }
  0x7d   : > { %820 = vmatpush3.bf16.msra.mxu0 %v486_v20 }
  0x7e   : > { %831 = vmatprep.subr.bf16.mxu0 %v1077_v0 }
  0xfb   : > { %v374_v22 = vpop.xlane.xlu0 %373 }
  0xfc   : > { %v434_v23 = vmul.f32 %v782_v21, %v374_v22 }
 0x14b   : > { %v417_v10 = vpop.f32.mrb[0].mxu0 }
 0x14c   : > { %v423_v11 = vpack.c.bf16 %v417_v10, %v417_v10  ;;  %v809_v12 = vpop.f32.mrb[1].mxu0 }
 0x14d   : > { %v420_v13 = vpop.f32.mrb[2].mxu0 }
 0x14e   : > { %v810_v14 = vpop.f32.mrb[3].mxu0  ;;  %814 = vmatmul.mubr.msk.bf16.vlgmr.msra.gmra.mrb[0].mxu1 %vm435_vm3, %v423_v11 }
 0x14f   : > { %827 = vmatprep.mubr.msk.bf16.mxu1 %vm1078_vm0, %v1077_v0 }
 0x221   : > { %v473_v24 = vpop.f32.mrb[0].mxu1 }
 0x222   : > { %v474_v25 = vadd.f32 %v473_v24, %v434_v23  ;;  %v815_v26 = vpop.f32.mrb[1].mxu1 }
 0x223   : > { %v476_v27 = vpop.f32.mrb[2].mxu1 }
 0x224   : > { %v479_v28 = vmax.f32 %v474_v25, 0.0  ;;  %v816_v29 = vpop.f32.mrb[3].mxu1 }
 0x226   : > { %v480_v30 = vpack.c.bf16 %v479_v28, %v479_v28 }
 0x228   : > { %822 = vmatmul.mubr.msk.bf16.vlgmr.msra.gmra.mrb[4].mxu0 %vm494_vm4, %v480_v30 }
 0x229   : > { %835 = vmatprep.mubr.msk.bf16.mxu0 %vm1078_vm0, %v1077_v0  ;;  %832 = vmatpush3.bf16.msra.mxu0 %v588_v33 }
 0x22a   : > { %833 = vmatprep.subr.bf16.mxu0 %v1077_v0 }
 0x22d   : > { %834 = vmatpush3.bf16.msra.mxu0 %v589_v44 }
 0x2fb   : > { %v532_v35 = vpop.f32.mrb[4].mxu0 }
 0x2fc   : > { %v533_v36 = vadd.f32 %v784_v34, %v532_v35  ;;  %v823_v37 = vpop.f32.mrb[5].mxu0 }
 0x2fd   : > { %v535_v38 = vpop.f32.mrb[6].mxu0 }
 0x2fe   : > { %v538_v39 = vpack.c.bf16 %v533_v36, %v533_v36  ;;  %v824_v40 = vpop.f32.mrb[7].mxu0 }
 0x300   : > { %v540_v41 = vsel %vm379_vm1, %v538_v39, 0 }
 0x301   : > { %826 = vmatpush3.bf16.msra.mxu1 %v540_v41 }
 0x304   : > { %828 = vmatmul.mubr.msk.bf16.vlgmr.msra.gmra.mrb[4].mxu1 %vm371_vm2, %v370_v5 }
 0x3d7   : > { %v576_v45 = vpop.f32.mrb[4].mxu1 }
 0x3d8   : > { %v582_v46 = vmax.f32 %v576_v45, 0.0  ;;  %v829_v47 = vpop.f32.mrb[5].mxu1 }
 0x3d9   : > { %v579_v48 = vpop.f32.mrb[6].mxu1 }
 0x3da   : > { %v583_v49 = vpack.c.bf16 %v582_v46, %v582_v46  ;;  %v830_v50 = vpop.f32.mrb[7].mxu1 }
 0x3dc   : > { %836 = vmatmul.mubr.msk.bf16.vlgmr.msra.gmra.mrb[8].mxu0 %vm494_vm4, %v583_v49 }
 0x4af   : > { %v634_v52 = vpop.f32.mrb[8].mxu0 }
 0x4b0   : > { %v635_v53 = vadd.f32 %v787_v51, %v634_v52  ;;  %v837_v54 = vpop.f32.mrb[9].mxu0 }
 0x4b1   : > { %v637_v55 = vpop.f32.mrb[10].mxu0 }
 0x4b2   : > { %v640_v56 = vsel %vm371_vm2, %v635_v53, -inf  ;;  %v838_v57 = vpop.f32.mrb[11].mxu0 }
 0x4b3   : > { %641 = vmax.xlane.f32.xlu0 %v640_v56 }
 0x540   : > { %v642_v58 = vpop.xlane.xlu0 %641 }
 0x541   : > { %v643_v59 = vsub.f32 %v635_v53, %v642_v58 }
 0x543   : > { %v644_v60 = vmul.f32 1.442695, %v643_v59 }
 0x545   : > { %910 = vpow2.f32 %v644_v60 }
 0x54f   : > { %v911_v61 = vpop.eup %910 }
 0x550   : > { %v646_v62 = vsel %vm371_vm2, %v911_v61, 0.0 }
 0x551   : > { %647 = vadd.xlane.f32.xlu1 %v646_v62 }
 0x5de   : > { %v648_v63 = vpop.xlane.xlu1 %647 }
 0x5df   : > { %912 = vlog2.f32 %v648_v63 }
 0x5e9   : > { %v913_v0 = vpop.eup %912 }
 0x5ea   : > { %v650_v1 = vmul.f32 0.6931472, %v913_v0 }
 0x5ec   : > { %v651_v2 = vsub.f32 %v643_v59, %v650_v1 }
 0x5ee   : > { %652 = vst.msk [vmem:[%s362_s15] sm:$0xff] %vm371_vm2, %v651_v2 }
 0x5ef   : > { %1013 = shalt.err (!%p1010_p9)
}
 0x5f0   : > { %s1014_s21 = scalar_lea.hbm %s1346_s26, 128  ;;  %s1018_s14 = scalar_lea.hbm %s1398_s8, 512 }
 0x5f1   : > { %p1015_p12 = scmp.ne.s32.totalorder %s1346_s26, %s1014_s21  ;;  %p1019_p10 = scmp.lt.u32.totalorder %s1346_s26, %s1398_s8 }
 0x5f2   : > { %p1020_p11 = scmp.lt.u32.totalorder %s1018_s14, %s1014_s21  ;;  %p1022_p2 = scmp.lt.u32.totalorder %s1014_s21, %s1346_s26 }
 0x5f3   : > { %p1016_p5 = pnand %p1015_p12, %p1237_p4 }
 0x5f4   : > { %p1021_p1 = por %p1020_p11, %p1019_p10 }
 0x5f5   : > { %p1017_p0 = pneg %p1016_p5 }
 0x5f6   : > { %p1023_p6 = por %p1022_p2, %p1021_p1 }
 0x5f8   : > { %p1024_p8 = pnand %p1023_p6, %p1017_p0 }
 0x5fa   : > { %1027 = shalt.err (!%p1024_p8)
}
 0x5fb   : > { %849 = dma.vmem_to_hbm [thread:$0]  (%p1237_p4), %s1348_s24, 128, %s1346_s26, %s654_s17  }
 0x5fc PF: > { %p871_p13 = scmp.ge.s32.totalorder %s1070_s30, 2  ;;  %s679_s11 = sand.u32 1, %s1058_s27  }
 0x5fd   : > { %p1413_p3 = scmp.ne.s32.totalorder %s1403_s12, 0  ;;  %s680_s19 = scalar_lea.sflag [#allocation4], %s679_s11 }
 0x5ff   : > { %p863_p7 = pnand %p871_p13, %p1413_p3 }
 0x601   : > { %1053 = dma.done.wait (!%p863_p7), %s680_s19, 128  }
 0x602   : > { %1055 = vsyncadd (!%p863_p7), %s680_s19, 4294967168  ;;  %p22_p9 = scmp.ge.s32.totalorder %s1227_s20, 6   ;;  %s1414_s27 = smov %s1062_s28 }
 0x603   : > { %s1415_s28 = smov %s1066_s29  ;;  %s1416_s29 = smov %s1243_s23 }
 0x604   : > { %s1417_s30 = smov %s1227_s20  ;;  %24 = sbr.rel (!%p22_p9) target bundleno = 6 (0x6), region = 108 }
 0x60b   :  { %685 = vsyncpa [#allocation3], 1 }
 0x60c   :  { %687 = vsyncpa [#allocation3 + $0x1], 1 }
 0x60d   :  { %688 = vsyncpa [#allocation6], 1 }
 0x60e   :  { %689 = vsyncpa [#allocation4], 1 }
 0x60f   :  { %691 = vsyncpa [#allocation4 + $0x1], 1 }

</bundles_post_ra>
